<compile_context>
chip_gen: v6e
topology: v6e:2x2x1
jax: 0.10.0
libtpu: 0.0.40
codegen_flags: <defaults>
</compile_context>

<pallas_src>
import functools

import jax
import jax.numpy as jnp
from jax.experimental import pallas as pl
from jax.experimental.pallas import tpu as pltpu


def _round_up(x, m):
    return ((x + m - 1) // m) * m


def _sage_mean_kernel(a_ref, xk_ref, xi_ref, w_ref, b_ref, o_ref,
                      acc_ref, deg_ref, *, apply_relu):
    """One SAGEConv(mean) layer, tiled over (dst rows, src reduction)."""
    k = pl.program_id(1)
    nk = pl.num_programs(1)

    @pl.when(k == 0)
    def _():
        acc_ref[...] = jnp.zeros_like(acc_ref)
        deg_ref[...] = jnp.zeros_like(deg_ref)

    a = a_ref[...]                                            # (TM, TK) bf16, values {0,1}
    # Neighbor-sum accumulation on the MXU (bf16 inputs, f32 accumulate).
    acc_ref[...] += jnp.dot(a, xk_ref[...], preferred_element_type=jnp.float32)
    # Degree accumulation in f32 (exact: 0/1 values).
    deg_ref[...] += jnp.sum(a.astype(jnp.float32), axis=-1, keepdims=True)

    @pl.when(k == nk - 1)
    def _():
        deg = deg_ref[...]                                    # (TM, 1) f32
        inv_deg = jnp.where(deg > 0.0,
                            pl.reciprocal(jnp.maximum(deg, 1.0), approx=True),
                            0.0)
        h_neigh = (acc_ref[...] * inv_deg).astype(jnp.bfloat16)   # (TM, F_in_p)
        h_self = xi_ref[...]                                      # (TM, F_in_p) bf16
        # Fused self/neigh transform: single MXU GEMM with doubled contraction K.
        h_cat = jnp.concatenate([h_self, h_neigh], axis=-1)       # (TM, 2*F_in_p)
        out = jnp.dot(h_cat, w_ref[...], preferred_element_type=jnp.float32)
        out = out + b_ref[...]
        if apply_relu:
            out = jnp.maximum(out, 0.0)
        o_ref[...] = out.astype(o_ref.dtype)


def sage_conv(a, x, w_self, w_neigh, bias, *, apply_relu=False, tile=128):
    """One SAGEConv(mean) layer via a tiled pallas_call.

    a       : (N_dst, N_src) dense block adjacency (0/1)
    x       : (N_src, F_in)  src-node features
    w_self  : (F_out, F_in)  torch.nn.Linear weight layout
    w_neigh : (F_out, F_in)
    bias    : (F_out,)
    """
    n_dst, n_src = a.shape
    f_in = x.shape[1]
    f_out = w_self.shape[0]

    tm = tk = tile                                   # same tile on both axes keeps the
    n_dst_p = _round_up(n_dst, tm)                   # self-row BlockSpec indexing valid
    n_src_p = max(_round_up(n_src, tk), n_dst_p)     # (dst nodes lead the src nodes)
    f_in_p = _round_up(f_in, 128)
    f_out_p = _round_up(f_out, 128)

    # bf16 adjacency (bit-exact for 0/1 masks) and bf16 features; f32 accumulation in-kernel.
    a_p = jnp.zeros((n_dst_p, n_src_p), jnp.bfloat16).at[:n_dst, :n_src].set(
        jnp.asarray(a, jnp.bfloat16))
    x_p = jnp.zeros((n_src_p, f_in_p), jnp.bfloat16).at[:n_src, :f_in].set(
        jnp.asarray(x, jnp.bfloat16))

    # Stacked [W_self^T ; W_neigh^T] -> (2*F_in_p, F_out_p), zero-padded lane-dense.
    ws_t = jnp.zeros((f_in_p, f_out_p), jnp.float32).at[:f_in, :f_out].set(
        jnp.asarray(w_self, jnp.float32).T)
    wn_t = jnp.zeros((f_in_p, f_out_p), jnp.float32).at[:f_in, :f_out].set(
        jnp.asarray(w_neigh, jnp.float32).T)
    w_cat = jnp.concatenate([ws_t, wn_t], axis=0).astype(jnp.bfloat16)
    b_p = jnp.zeros((1, f_out_p), jnp.float32).at[0, :f_out].set(
        jnp.asarray(bias, jnp.float32))

    kernel = functools.partial(_sage_mean_kernel, apply_relu=apply_relu)

    out_p = pl.pallas_call(
        kernel,
        out_shape=jax.ShapeDtypeStruct((n_dst_p, f_out_p), jnp.float32),
        grid_spec=pltpu.PrefetchScalarGridSpec(
            num_scalar_prefetch=0,
            grid=(n_dst_p // tm, n_src_p // tk),
            in_specs=[
                pl.BlockSpec((tm, tk), lambda i, k: (i, k)),            # A tile
                pl.BlockSpec((tk, f_in_p), lambda i, k: (k, 0)),        # X rows for aggregation
                pl.BlockSpec((tm, f_in_p), lambda i, k: (i, 0)),        # X rows for h_self
                pl.BlockSpec((2 * f_in_p, f_out_p), lambda i, k: (0, 0)),  # stacked weights
                pl.BlockSpec((1, f_out_p), lambda i, k: (0, 0)),        # bias
            ],
            out_specs=pl.BlockSpec((tm, f_out_p), lambda i, k: (i, 0)),
            scratch_shapes=[
                pltpu.VMEM((tm, f_in_p), jnp.float32),   # neighbor-sum accumulator
                pltpu.VMEM((tm, 1), jnp.float32),        # degree accumulator
            ],
        ),
        compiler_params=pltpu.CompilerParams(
            dimension_semantics=("parallel", "arbitrary"),
            vmem_limit_bytes=32 * 1024 * 1024,
        ),
    )(a_p, x_p, x_p, w_cat, b_p)

    return out_p[:n_dst, :f_out]


def graphsage_forward(params, blocks, x):
    """Mirror of GraphSAGE.forward: conv1 -> relu -> conv2 (ReLU fused into conv1)."""
    a0, a1 = blocks
    h = sage_conv(a0, x,
                  params["conv1"]["w_self"], params["conv1"]["w_neigh"],
                  params["conv1"]["bias"], apply_relu=True)
    out = sage_conv(a1, h,
                    params["conv2"]["w_self"], params["conv2"]["w_neigh"],
                    params["conv2"]["bias"], apply_relu=False)
    return out


def init_params(key, in_channels, hidden_channels, out_channels):
    k = jax.random.split(key, 6)

    def lin(kk, fo, fi):
        scale = 1.0 / jnp.sqrt(fi)
        return jax.random.uniform(kk, (fo, fi), jnp.float32, -scale, scale)

    return {
        "conv1": {
            "w_self": lin(k[0], hidden_channels, in_channels),
            "w_neigh": lin(k[1], hidden_channels, in_channels),
            "bias": jax.random.uniform(k[2], (hidden_channels,), jnp.float32, -0.1, 0.1),
        },
        "conv2": {
            "w_self": lin(k[3], out_channels, hidden_channels),
            "w_neigh": lin(k[4], out_channels, hidden_channels),
            "bias": jax.random.uniform(k[5], (out_channels,), jnp.float32, -0.1, 0.1),
        },
    }


if __name__ == "__main__":
    key = jax.random.PRNGKey(0)
    kx, ka0, ka1, kp = jax.random.split(key, 4)

    in_channels, hidden_channels, out_channels = 8, 16, 4
    n_src0, n_dst0, n_dst1 = 16, 8, 4      # block0: 16 src -> 8 dst ; block1: 8 src -> 4 dst

    x = jax.random.normal(kx, (n_src0, in_channels), jnp.float32)
    a0 = jax.random.bernoulli(ka0, 0.4, (n_dst0, n_src0)).astype(jnp.float32)
    a1 = jax.random.bernoulli(ka1, 0.4, (n_dst1, n_dst0)).astype(jnp.float32)

    params = init_params(kp, in_channels, hidden_channels, out_channels)

    out = graphsage_forward(params, (a0, a1), x)
    out = jax.block_until_ready(out)

    # Pure-JAX reference that mirrors the kernel's bf16 matmul inputs / f32 accumulation.
    def ref_layer(a, xx, ws, wn, b, relu):
        a16 = jnp.asarray(a, jnp.bfloat16)
        x16 = jnp.asarray(xx, jnp.bfloat16)
        deg = jnp.asarray(a, jnp.float32).sum(-1, keepdims=True)
        inv = jnp.where(deg > 0, 1.0 / jnp.maximum(deg, 1.0), 0.0)
        hn = (jnp.dot(a16, x16, preferred_element_type=jnp.float32) * inv).astype(jnp.bfloat16)
        hs = x16[: a.shape[0]]
        o = (jnp.dot(hs, jnp.asarray(ws, jnp.bfloat16).T, preferred_element_type=jnp.float32)
             + jnp.dot(hn, jnp.asarray(wn, jnp.bfloat16).T, preferred_element_type=jnp.float32)
             + jnp.asarray(b, jnp.float32))
        return jnp.maximum(o, 0.0) if relu else o

    h_ref = ref_layer(a0, x, params["conv1"]["w_self"], params["conv1"]["w_neigh"],
                      params["conv1"]["bias"], True)
    out_ref = ref_layer(a1, h_ref, params["conv2"]["w_self"], params["conv2"]["w_neigh"],
                        params["conv2"]["bias"], False)

    assert out.shape == (n_dst1, out_channels)
    assert jnp.allclose(out, out_ref, atol=3e-2, rtol=3e-2), (
        f"max abs diff {jnp.max(jnp.abs(out - out_ref))}")

    print("KERNEL_OK")
</pallas_src>

<mosaic_0001>
module attributes {stable_mosaic.version = 11 : i64} {
  func.func @_sage_mean_kernel(%arg0: i32, %arg1: i32, %arg2: memref<128x128xbf16, #tpu.memory_space<vmem>>, %arg3: memref<128x128xbf16, #tpu.memory_space<vmem>>, %arg4: memref<128x128xbf16, #tpu.memory_space<vmem>>, %arg5: memref<256x128xbf16, #tpu.memory_space<vmem>>, %arg6: memref<1x128xf32, #tpu.memory_space<vmem>>, %arg7: memref<128x128xf32, #tpu.memory_space<vmem>>, %arg8: memref<128x128xf32, #tpu.memory_space<vmem>>, %arg9: memref<128x1xf32, #tpu.memory_space<vmem>>) attributes {dimension_semantics = [#tpu.dimension_semantics<parallel>, #tpu.dimension_semantics<arbitrary>], iteration_bounds = array<i64: 1, 1>, scalar_prefetch = 0 : i64, scratch_operands = 2 : i64, tpu.core_type = #tpu.core_type<tc>, window_params = [{transform_indices = @transform_0, window_bounds = array<i64: 128, 128>}, {transform_indices = @transform_1, window_bounds = array<i64: 128, 128>}, {transform_indices = @transform_2, window_bounds = array<i64: 128, 128>}, {pipeline_mode = #tpu.pipeline_mode<synchronous>, transform_indices = @transform_3, window_bounds = array<i64: 256, 128>}, {pipeline_mode = #tpu.pipeline_mode<synchronous>, transform_indices = @transform_4, window_bounds = array<i64: 1, 128>}, {transform_indices = @transform_5, window_bounds = array<i64: 128, 128>}]} {
    %c0_i32 = arith.constant 0 : i32
    %0 = arith.cmpi eq, %arg1, %c0_i32 : i32
    %1 = arith.extui %0 : i1 to i32
    %c0_i32_0 = arith.constant 0 : i32
    %2 = arith.cmpi ne, %1, %c0_i32_0 : i32
    scf.if %2 {
      %cst_15 = arith.constant 0.000000e+00 : f32
      %18 = vector.broadcast %cst_15 : f32 to vector<128x128xf32>
      %c0_16 = arith.constant 0 : index
      %c0_17 = arith.constant 0 : index
      %19 = vector.load %arg8[%c0_16, %c0_17] : memref<128x128xf32, #tpu.memory_space<vmem>>, vector<128x128xf32>
      tpu.vector_store %arg8[%c0_16, %c0_17], %18 {strides = array<i32>} : memref<128x128xf32, #tpu.memory_space<vmem>>, vector<128x128xf32>,
      %cst_18 = arith.constant 0.000000e+00 : f32
      %20 = vector.broadcast %cst_18 : f32 to vector<128x1xf32>
      %c0_19 = arith.constant 0 : index
      %c0_20 = arith.constant 0 : index
      %21 = vector.load %arg9[%c0_19, %c0_20] : memref<128x1xf32, #tpu.memory_space<vmem>>, vector<128x1xf32>
      tpu.vector_store %arg9[%c0_19, %c0_20], %20 {strides = array<i32>} : memref<128x1xf32, #tpu.memory_space<vmem>>, vector<128x1xf32>,
    } else {
    }
    %c0 = arith.constant 0 : index
    %c0_1 = arith.constant 0 : index
    %3 = vector.load %arg2[%c0, %c0_1] : memref<128x128xbf16, #tpu.memory_space<vmem>>, vector<128x128xbf16>
    %c0_2 = arith.constant 0 : index
    %c0_3 = arith.constant 0 : index
    %4 = vector.load %arg8[%c0_2, %c0_3] : memref<128x128xf32, #tpu.memory_space<vmem>>, vector<128x128xf32>
    %c0_4 = arith.constant 0 : index
    %c0_5 = arith.constant 0 : index
    %5 = vector.load %arg3[%c0_4, %c0_5] : memref<128x128xbf16, #tpu.memory_space<vmem>>, vector<128x128xbf16>
    %cst = arith.constant dense<0.000000e+00> : vector<128x128xf32>
    %6 = tpu.matmul %3, %5, %cst {dimension_numbers = #tpu.dot_dimension_numbers<[1], [0], [0], [1], [0, 0, 1, 1], [], []>} : vector<128x128xbf16>, vector<128x128xbf16>, vector<128x128xf32> -> vector<128x128xf32>
    %7 = arith.addf %4, %6 : vector<128x128xf32>
    %c0_6 = arith.constant 0 : index
    %c0_7 = arith.constant 0 : index
    %8 = vector.load %arg8[%c0_6, %c0_7] : memref<128x128xf32, #tpu.memory_space<vmem>>, vector<128x128xf32>
    tpu.vector_store %arg8[%c0_6, %c0_7], %7 {strides = array<i32>} : memref<128x128xf32, #tpu.memory_space<vmem>>, vector<128x128xf32>,
    %c0_8 = arith.constant 0 : index
    %c0_9 = arith.constant 0 : index
    %9 = vector.load %arg9[%c0_8, %c0_9] : memref<128x1xf32, #tpu.memory_space<vmem>>, vector<128x1xf32>
    %10 = arith.extf %3 : vector<128x128xbf16> to vector<128x128xf32>
    %cst_10 = arith.constant dense<0.000000e+00> : vector<128xf32>
    %11 = vector.multi_reduction <add>, %10, %cst_10 [1] : vector<128x128xf32> to vector<128xf32>
    %12 = vector.shape_cast %11 : vector<128xf32> to vector<128x1xf32>
    %13 = arith.addf %9, %12 : vector<128x1xf32>
    %c0_11 = arith.constant 0 : index
    %c0_12 = arith.constant 0 : index
    %14 = vector.load %arg9[%c0_11, %c0_12] : memref<128x1xf32, #tpu.memory_space<vmem>>, vector<128x1xf32>
    tpu.vector_store %arg9[%c0_11, %c0_12], %13 {strides = array<i32>} : memref<128x1xf32, #tpu.memory_space<vmem>>, vector<128x1xf32>,
    %c0_i32_13 = arith.constant 0 : i32
    %15 = arith.cmpi eq, %arg1, %c0_i32_13 : i32
    %16 = arith.extui %15 : i1 to i32
    %c0_i32_14 = arith.constant 0 : i32
    %17 = arith.cmpi ne, %16, %c0_i32_14 : i32
    scf.if %17 {
      %c0_15 = arith.constant 0 : index
      %c0_16 = arith.constant 0 : index
      %18 = vector.load %arg9[%c0_15, %c0_16] : memref<128x1xf32, #tpu.memory_space<vmem>>, vector<128x1xf32>
      %cst_17 = arith.constant 0.000000e+00 : f32
      %19 = vector.broadcast %cst_17 : f32 to vector<128x1xf32>
      %20 = arith.cmpf ogt, %18, %19 : vector<128x1xf32>
      %cst_18 = arith.constant 1.000000e+00 : f32
      %21 = vector.broadcast %cst_18 : f32 to vector<128x1xf32>
      %22 = arith.maximumf %18, %21 : vector<128x1xf32>
      %23 = tpu.reciprocal %22 {approx = true} : vector<128x1xf32> -> vector<128x1xf32>
      %cst_19 = arith.constant 0.000000e+00 : f32
      %24 = vector.broadcast %cst_19 : f32 to vector<128x1xf32>
      %25 = arith.select %20, %23, %24 : vector<128x1xi1>, vector<128x1xf32>
      %c0_20 = arith.constant 0 : index
      %c0_21 = arith.constant 0 : index
      %26 = vector.load %arg8[%c0_20, %c0_21] : memref<128x128xf32, #tpu.memory_space<vmem>>, vector<128x128xf32>
      %27 = vector.broadcast %25 : vector<128x1xf32> to vector<128x128xf32>
      %28 = arith.mulf %26, %27 : vector<128x128xf32>
      %29 = arith.truncf %28 : vector<128x128xf32> to vector<128x128xbf16>
      %c0_22 = arith.constant 0 : index
      %c0_23 = arith.constant 0 : index
      %30 = vector.load %arg4[%c0_22, %c0_23] : memref<128x128xbf16, #tpu.memory_space<vmem>>, vector<128x128xbf16>
      %31 = tpu.concatenate %30, %29 in 1 : vector<128x128xbf16>, vector<128x128xbf16> -> vector<128x256xbf16>
      %c0_24 = arith.constant 0 : index
      %c0_25 = arith.constant 0 : index
      %32 = vector.load %arg5[%c0_24, %c0_25] : memref<256x128xbf16, #tpu.memory_space<vmem>>, vector<256x128xbf16>
      %cst_26 = arith.constant dense<0.000000e+00> : vector<128x128xf32>
      %33 = tpu.matmul %31, %32, %cst_26 {dimension_numbers = #tpu.dot_dimension_numbers<[1], [0], [0], [1], [0, 0, 1, 1], [], []>} : vector<128x256xbf16>, vector<256x128xbf16>, vector<128x128xf32> -> vector<128x128xf32>
      %c0_27 = arith.constant 0 : index
      %c0_28 = arith.constant 0 : index
      %34 = vector.load %arg6[%c0_27, %c0_28] : memref<1x128xf32, #tpu.memory_space<vmem>>, vector<1x128xf32>
      %35 = vector.broadcast %34 : vector<1x128xf32> to vector<128x128xf32>
      %36 = arith.addf %33, %35 : vector<128x128xf32>
      %cst_29 = arith.constant 0.000000e+00 : f32
      %37 = vector.broadcast %cst_29 : f32 to vector<128x128xf32>
      %38 = arith.maximumf %36, %37 : vector<128x128xf32>
      %c0_30 = arith.constant 0 : index
      %c0_31 = arith.constant 0 : index
      %39 = vector.load %arg7[%c0_30, %c0_31] : memref<128x128xf32, #tpu.memory_space<vmem>>, vector<128x128xf32>
      tpu.vector_store %arg7[%c0_30, %c0_31], %38 {strides = array<i32>} : memref<128x128xf32, #tpu.memory_space<vmem>>, vector<128x128xf32>,
    } else {
    }
    return
  }
  func.func @transform_0(%arg0: i32, %arg1: i32) -> (i32, i32) {
    %c0_i32 = arith.constant 0 : i32
    return %arg0, %arg1 : i32, i32
  }
  func.func @transform_1(%arg0: i32, %arg1: i32) -> (i32, i32) {
    %c0_i32 = arith.constant 0 : i32
    %c0_i32_0 = arith.constant 0 : i32
    return %arg1, %c0_i32 : i32, i32
  }
  func.func @transform_2(%arg0: i32, %arg1: i32) -> (i32, i32) {
    %c0_i32 = arith.constant 0 : i32
    %c0_i32_0 = arith.constant 0 : i32
    return %arg0, %c0_i32 : i32, i32
  }
  func.func @transform_3(%arg0: i32, %arg1: i32) -> (i32, i32) {
    %c0_i32 = arith.constant 0 : i32
    %c0_i32_0 = arith.constant 0 : i32
    %c0_i32_1 = arith.constant 0 : i32
    return %c0_i32, %c0_i32_0 : i32, i32
  }
  func.func @transform_4(%arg0: i32, %arg1: i32) -> (i32, i32) {
    %c0_i32 = arith.constant 0 : i32
    %c0_i32_0 = arith.constant 0 : i32
    %c0_i32_1 = arith.constant 0 : i32
    return %c0_i32, %c0_i32_0 : i32, i32
  }
  func.func @transform_5(%arg0: i32, %arg1: i32) -> (i32, i32) {
    %c0_i32 = arith.constant 0 : i32
    %c0_i32_0 = arith.constant 0 : i32
    return %arg0, %c0_i32 : i32, i32
  }
}

</mosaic_0001>

<bundles_post_ra>
// kernel: tpu_custom_call.1
= control target key start
LH: loop header
LB: loop body
LE: loop exit
PB: predicated region body
PF: predicated region fallthrough
CT: control target
= control target key end

     0   :  { %10 = vsyncpa [#allocation5], 0  ;;  %s1567_s0 = inlined_call_operand.hbm [shape: bf16[128,128], index: 0, kind: input, shape index: {}]   ;;  %s1568_s1 = inlined_call_operand.hbm [shape: bf16[128,128], index: 1, kind: input, shape index: {}]   ;;  %s1569_s2 = inlined_call_operand.hbm [shape: bf16[128,128], index: 2, kind: input, shape index: {}]   ;;  %s1570_s3 = inlined_call_operand.hbm [shape: bf16[256,128], index: 3, kind: input, shape index: {}]   ;;  %s1571_s4 = inlined_call_operand.vmem [shape: f32[1,128], index: 4, kind: input, shape index: {}]   ;;  %s1572_s5 = inlined_call_operand.hbm [shape: f32[128,128], index: 5, kind: output, shape index: {}]  }
   0x1   :  { %11 = vsyncpa [#allocation8], 0 }
   0x2   :  { %12 = vsyncpa [#allocation11], 0 }
   0x3   :  { %13 = vsyncpa [#allocation6], 0  ;;  %s1404_s18 = smov [#allocation7]   ;;  %s1405_s20 = smov [#allocation4]  }
   0x4   :  { %s31_s19 = sshll.u32 %s1404_s18, 4  ;;  %s19_s21 = sshll.u32 %s1405_s20, 4  ;;  %s32_s19 = int_to_ptr.vmem [resolvable:$true] %s31_s19  ;;  %s20_s21 = int_to_ptr.vmem [resolvable:$true] %s19_s21 }
   0x5   :  { %s1304_s22 = scalar_lea.vmem %s32_s19, 1024  ;;  %p1309_p1 = scmp.lt.s32.totalorder %s32_s19, %s32_s19 }
   0x6   :  { %p1305_p0 = scmp.ne.s32.totalorder %s32_s19, %s1304_s22  ;;  %p1310_p2 = scmp.lt.s32.totalorder %s1304_s22, %s1304_s22 }
   0x8   :  { %p1311_p3 = por %p1310_p2, %p1309_p1 }
   0xa   :  { %p1312_p4 = pnand %p1311_p3, %p1305_p0 }
   0xc   :  { %1315 = shalt.err (!%p1312_p4)
}
   0xd   :  { %s1406_s23 = smov 64   ;;  %s1407_s24 = smov 4  }
   0xe   :  { %37 = dma.hbm_to_vmem [thread:$0]  %s1568_s1, 1024, %s32_s19, [#allocation8], %s1406_s23, %s1406_s23, %s1407_s24  }
   0xf   :  { %s1324_s27 = scalar_lea.vmem %s20_s21, 1024  ;;  %p1329_p6 = scmp.lt.s32.totalorder %s20_s21, %s20_s21 }
  0x10   :  { %p1325_p5 = scmp.ne.s32.totalorder %s20_s21, %s1324_s27  ;;  %p1330_p7 = scmp.lt.s32.totalorder %s1324_s27, %s1324_s27 }
  0x12   :  { %p1331_p8 = por %p1330_p7, %p1329_p6 }
  0x14   :  { %p1332_p9 = pnand %p1331_p8, %p1325_p5 }
  0x16   :  { %1335 = shalt.err (!%p1332_p9)
}
  0x17   :  { %25 = dma.hbm_to_vmem [thread:$0]  %s1567_s0, 1024, %s20_s21, [#allocation5], %s1406_s23, %s1406_s23, %s1407_s24  }
  0x18   :  { %s1408_s30 = smov [#allocation9]   ;;  %s1409_s7 = smov [#allocation10]  }
  0x19   :  { %s43_s6 = sshll.u32 %s1408_s30, 4  ;;  %s55_s8 = sshll.u32 %s1409_s7, 4  ;;  %s44_s6 = int_to_ptr.vmem [resolvable:$true] %s43_s6  ;;  %s56_s8 = int_to_ptr.vmem [resolvable:$true] %s55_s8 }
  0x1a   :  { %s1344_s1 = scalar_lea.vmem %s44_s6, 1024  ;;  %p1349_p11 = scmp.lt.s32.totalorder %s44_s6, %s44_s6 }
  0x1b   :  { %p1345_p10 = scmp.ne.s32.totalorder %s44_s6, %s1344_s1  ;;  %p1350_p12 = scmp.lt.s32.totalorder %s1344_s1, %s1344_s1 }
  0x1d   :  { %p1351_p13 = por %p1350_p12, %p1349_p11 }
  0x1f   :  { %p1352_p0 = pnand %p1351_p13, %p1345_p10 }
  0x21   :  { %1355 = shalt.err (!%p1352_p0)
}
  0x22   :  { %49 = dma.hbm_to_vmem [thread:$0]  %s1569_s2, 1024, %s44_s6, [#allocation8], %s1406_s23, %s1406_s23, %s1407_s24  }
  0x23   :  { %s1364_s0 = scalar_lea.vmem %s56_s8, 2048  ;;  %p1369_p2 = scmp.lt.s32.totalorder %s56_s8, %s56_s8 }
  0x24   :  { %p1365_p1 = scmp.ne.s32.totalorder %s56_s8, %s1364_s0  ;;  %p1370_p3 = scmp.lt.s32.totalorder %s1364_s0, %s1364_s0 }
  0x26   :  { %p1371_p4 = por %p1370_p3, %p1369_p2 }
  0x28   :  { %p1372_p5 = pnand %p1371_p4, %p1365_p1 }
  0x2a   :  { %1375 = shalt.err (!%p1372_p5)
}
  0x2b   :  { %61 = dma.hbm_to_vmem [thread:$0]  %s1570_s3, 2048, %s56_s8, [#allocation11], %s1406_s23, %s1406_s23, %s1407_s24  }
  0x2c   :  { %1396 = dma.done.wait [#allocation5], 1024  }
  0x2d   :  { %1397 = vsyncadd [#allocation5], 4294966272 }
  0x2e   :  { %1398 = dma.done.wait [#allocation8], 2048  }
  0x2f   :  { %1399 = vsyncadd [#allocation8], 4294965248 }
  0x30   :  { %1400 = dma.done.wait [#allocation11], 2048  }
  0x31   :  { %1401 = vsyncadd [#allocation11], 4294965248  ;;  %vm97_vm0 = vcmask 7168   ;;  %v1410_v0 = vmov 0.0   ;;  %v1485_v1 = vld [vmem:[#allocation4 + $0x18] sm:$0xff]   ;;  %v1487_v2 = vld [vmem:[#allocation4 + $0x10] sm:$0xff]  }
  0x32   :  { %104 = vst.msk [vmem:[#allocation3 + $0x30] sm:$0xff] %vm97_vm0, %v1410_v0  ;;  %98 = vst.msk [vmem:[#allocation3] sm:$0xff] %vm97_vm0, %v1410_v0  ;;  %v409_v3 = vunpack.c.l.bf16 %v1485_v1  ;;  %v407_v4 = vunpack.c.l.bf16 %v1487_v2  ;;  %v1491_v5 = vld [vmem:[#allocation4 + $0x20] sm:$0xff]   ;;  %v410_v6 = vunpack.c.h.bf16 %v1485_v1  ;;  %v408_v7 = vunpack.c.h.bf16 %v1487_v2  ;;  %v1223_v8 = vld [vmem:[#allocation7 + $0x38] sm:$0xff]  }
  0x33   :  { %99 = vst.msk [vmem:[#allocation3 + $0x8] sm:$0xff] %vm97_vm0, %v1410_v0  ;;  %100 = vst.msk [vmem:[#allocation3 + $0x10] sm:$0xff] %vm97_vm0, %v1410_v0  ;;  %v1224_v9 = vld [vmem:[#allocation7 + $0x30] sm:$0xff]   ;;  %v115_v10 = vld [vmem:[#allocation4] sm:$0xff]   ;;  %1155 = vmatprep.subr.bf16.mxu0 %v1223_v8  ;;  %v412_v11 = vunpack.c.h.bf16 %v1491_v5  ;;  %v411_v12 = vunpack.c.l.bf16 %v1491_v5  ;;  %v1411_v33 = vmov 0  }
  0x34   :  { %101 = vst.msk [vmem:[#allocation3 + $0x18] sm:$0xff] %vm97_vm0, %v1410_v0  ;;  %102 = vst.msk [vmem:[#allocation3 + $0x20] sm:$0xff] %vm97_vm0, %v1410_v0  ;;  %431 = vadd.xlane.f32.xlu1 %v409_v3  ;;  %427 = vadd.xlane.f32.xlu0 %v407_v4  ;;  %v125_v13 = vld [vmem:[#allocation4 + $0x28] sm:$0xff]   ;;  %v1226_v17 = vld [vmem:[#allocation7 + $0x20] sm:$0xff]   ;;  %v404_v18 = vunpack.c.h.bf16 %v115_v10  ;;  %v403_v19 = vunpack.c.l.bf16 %v115_v10 }
  0x35   :  { %103 = vst.msk [vmem:[#allocation3 + $0x28] sm:$0xff] %vm97_vm0, %v1410_v0  ;;  %105 = vst.msk [vmem:[#allocation3 + $0x38] sm:$0xff] %vm97_vm0, %v1410_v0  ;;  %1156 = vmatpush3.bf16.msra.mxu0 %v1223_v8  ;;  %v1225_v14 = vld [vmem:[#allocation7 + $0x28] sm:$0xff]   ;;  %1171 = vmatprep.mubr.bf16.mxu0 %v115_v10  ;;  %v414_v15 = vunpack.c.h.bf16 %v125_v13  ;;  %v413_v16 = vunpack.c.l.bf16 %v125_v13  ;;  %v127_v20 = vld [vmem:[#allocation4 + $0x30] sm:$0xff]  }
  0x36   :  { %106 = vst.msk [vmem:[#allocation3 + $0x40] sm:$0xff] %vm97_vm0, %v1410_v0  ;;  %107 = vst.msk [vmem:[#allocation3 + $0x48] sm:$0xff] %vm97_vm0, %v1410_v0  ;;  %1157 = vmatprep.subr.bf16.mxu0 %v1224_v9  ;;  %v1227_v21 = vld [vmem:[#allocation7 + $0x18] sm:$0xff]   ;;  %v416_v22 = vunpack.c.h.bf16 %v127_v20  ;;  %v415_v23 = vunpack.c.l.bf16 %v127_v20  ;;  %v117_v24 = vld [vmem:[#allocation4 + $0x8] sm:$0xff]   ;;  %1214 = vset.pattern.permute.xlu0 %v1411_v33 }
  0x37   :  { %108 = vst.msk [vmem:[#allocation3 + $0x50] sm:$0xff] %vm97_vm0, %v1410_v0  ;;  %109 = vst.msk [vmem:[#allocation3 + $0x58] sm:$0xff] %vm97_vm0, %v1410_v0  ;;  %v1228_v25 = vld [vmem:[#allocation7 + $0x10] sm:$0xff]   ;;  %v406_v26 = vunpack.c.h.bf16 %v117_v24  ;;  %v405_v27 = vunpack.c.l.bf16 %v117_v24  ;;  %v129_v28 = vld [vmem:[#allocation4 + $0x38] sm:$0xff]   ;;  %1215 = vset.pattern.permute.xlu1 %v1411_v33 }
  0x38   :  { %110 = vst.msk [vmem:[#allocation3 + $0x60] sm:$0xff] %vm97_vm0, %v1410_v0  ;;  %111 = vst.msk [vmem:[#allocation3 + $0x68] sm:$0xff] %vm97_vm0, %v1410_v0  ;;  %433 = vadd.xlane.f32.xlu1 %v410_v6  ;;  %429 = vadd.xlane.f32.xlu0 %v408_v7  ;;  %v1229_v29 = vld [vmem:[#allocation7 + $0x8] sm:$0xff]   ;;  %v418_v30 = vunpack.c.h.bf16 %v129_v28  ;;  %v417_v31 = vunpack.c.l.bf16 %v129_v28  ;;  %v1230_v32 = vld [vmem:[#allocation7] sm:$0xff]  }
  0x39   :  { %112 = vst.msk [vmem:[#allocation3 + $0x70] sm:$0xff] %vm97_vm0, %v1410_v0  ;;  %113 = vst.msk [vmem:[#allocation3 + $0x78] sm:$0xff] %vm97_vm0, %v1410_v0  ;;  %1158 = vmatpush3.bf16.msra.mxu0 %v1224_v9  ;;  %v1232_v34 = vld [vmem:[#allocation10 + $0x78] sm:$0xff]   ;;  %v1234_v36 = vld [vmem:[#allocation10 + $0x70] sm:$0xff]  }
  0x3a   :  { %1159 = vmatprep.subr.bf16.mxu0 %v1225_v14  ;;  %v1233_v35 = vld [vmem:[#allocation10 + $0x38] sm:$0xff]   ;;  %1187 = vmatprep.subr.bf16.mxu1 %v1232_v34  ;;  %v1235_v37 = vld [vmem:[#allocation10 + $0x30] sm:$0xff]   ;;  %v1236_v38 = vld [vmem:[#allocation10 + $0x68] sm:$0xff]  }
  0x3b   :  { %1195 = vmatpush3.bf16.msra.mxu1 %v1233_v35  ;;  %v1237_v39 = vld [vmem:[#allocation10 + $0x28] sm:$0xff]   ;;  %v1238_v40 = vld [vmem:[#allocation10 + $0x60] sm:$0xff]   ;;  %v1240_v42 = vld [vmem:[#allocation10 + $0x58] sm:$0xff]  }
  0x3c   :  { %437 = vadd.xlane.f32.xlu1 %v412_v11  ;;  %435 = vadd.xlane.f32.xlu0 %v411_v12  ;;  %v1239_v41 = vld [vmem:[#allocation10 + $0x20] sm:$0xff]   ;;  %v1241_v43 = vld [vmem:[#allocation10 + $0x18] sm:$0xff]   ;;  %v1242_v44 = vld [vmem:[#allocation10 + $0x50] sm:$0xff]  }
  0x3d   :  { %1160 = vmatpush3.bf16.msra.mxu0 %v1225_v14  ;;  %1188 = vmatprep.subr.bf16.mxu1 %v1234_v36  ;;  %v1243_v45 = vld [vmem:[#allocation10 + $0x10] sm:$0xff]   ;;  %v391_v47 = vld [vmem:[#allocation3 + $0x20] sm:$0xff]  ;;  %v394_v52 = vld [vmem:[#allocation3 + $0x38] sm:$0xff] }
  0x3e   :  { %1161 = vmatprep.subr.bf16.mxu0 %v1226_v17  ;;  %v393_v46 = vld [vmem:[#allocation3 + $0x30] sm:$0xff]  ;;  %v392_v53 = vld [vmem:[#allocation3 + $0x28] sm:$0xff]  ;;  %v395_v59 = vld [vmem:[#allocation3 + $0x40] sm:$0xff] }
  0x3f   :  { %1196 = vmatpush3.bf16.msra.mxu1 %v1235_v37  ;;  %v396_v58 = vld [vmem:[#allocation3 + $0x48] sm:$0xff]  ;;  %v398_v0 = vld [vmem:[#allocation3 + $0x58] sm:$0xff]  ;;  %v387_v10 = vld [vmem:[#allocation3] sm:$0xff] }
  0x40   :  { %441 = vadd.xlane.f32.xlu1 %v414_v15  ;;  %439 = vadd.xlane.f32.xlu0 %v413_v16  ;;  %v388_v9 = vld [vmem:[#allocation3 + $0x8] sm:$0xff] }
  0x41   :  { %1162 = vmatpush3.bf16.msra.mxu0 %v1226_v17  ;;  %1189 = vmatprep.subr.bf16.mxu1 %v1236_v38  ;;  %v1244_v33 = vld [vmem:[#allocation10 + $0x48] sm:$0xff]  }
  0x42   :  { %1163 = vmatprep.subr.bf16.mxu0 %v1227_v21 }
  0x43   :  { %1197 = vmatpush3.bf16.msra.mxu1 %v1237_v39 }
  0x44   :  { %421 = vadd.xlane.f32.xlu1 %v404_v18  ;;  %419 = vadd.xlane.f32.xlu0 %v403_v19  ;;  %v400_v19 = vld [vmem:[#allocation3 + $0x68] sm:$0xff] }
  0x45   :  { %1164 = vmatpush3.bf16.msra.mxu0 %v1227_v21  ;;  %1190 = vmatprep.subr.bf16.mxu1 %v1238_v40 }
  0x46   :  { %1165 = vmatprep.subr.bf16.mxu0 %v1228_v25 }
  0x47   :  { %1198 = vmatpush3.bf16.msra.mxu1 %v1239_v41 }
  0x48   :  { %445 = vadd.xlane.f32.xlu1 %v416_v22  ;;  %443 = vadd.xlane.f32.xlu0 %v415_v23 }
  0x49   :  { %1166 = vmatpush3.bf16.msra.mxu0 %v1228_v25  ;;  %1191 = vmatprep.subr.bf16.mxu1 %v1240_v42 }
  0x4a   :  { %1167 = vmatprep.subr.bf16.mxu0 %v1229_v29 }
  0x4b   :  { %1199 = vmatpush3.bf16.msra.mxu1 %v1241_v43 }
  0x4c   :  { %425 = vadd.xlane.f32.xlu1 %v406_v26  ;;  %423 = vadd.xlane.f32.xlu0 %v405_v27  ;;  %v390_v27 = vld [vmem:[#allocation3 + $0x18] sm:$0xff] }
  0x4d   :  { %1168 = vmatpush3.bf16.msra.mxu0 %v1229_v29  ;;  %1192 = vmatprep.subr.bf16.mxu1 %v1242_v44 }
  0x4e   :  { %1169 = vmatprep.subr.bf16.mxu0 %v1230_v32 }
  0x4f   :  { %1200 = vmatpush3.bf16.msra.mxu1 %v1243_v45 }
  0x50   :  { %449 = vadd.xlane.f32.xlu1 %v418_v30  ;;  %447 = vadd.xlane.f32.xlu0 %v417_v31 }
  0x51   :  { %1170 = vmatpush3.bf16.msra.mxu0 %v1230_v32  ;;  %1193 = vmatprep.subr.bf16.mxu1 %v1244_v33 }
  0x52   :  { %1091 = vmatprep.subr.bf16.mxu0 %v1232_v34  ;;  %v1245_v34 = vld [vmem:[#allocation10 + $0x8] sm:$0xff]  }
  0x53   :  { %1201 = vmatpush3.bf16.msra.mxu1 %v1245_v34 }
  0x54   :  { %1172 = vmatmul.mubr.bf16.vlgmr.msra.gmra.mxu0 %v117_v24 }
  0x55   :  { %1175 = vmatprep.mubr.bf16.mxu0 %v1487_v2  ;;  %1092 = vmatpush3.bf16.msra.mxu0 %v1233_v35 }
  0x56   :  { %1093 = vmatprep.subr.bf16.mxu0 %v1234_v36 }
  0x59   :  { %1094 = vmatpush3.bf16.msra.mxu0 %v1235_v37 }
  0x5a   :  { %1095 = vmatprep.subr.bf16.mxu0 %v1236_v38  ;;  %v402_v38 = vld [vmem:[#allocation3 + $0x78] sm:$0xff] }
  0x5c   :  { %1176 = vmatmul.mubr.bf16.gmra.mxu0 %v1485_v1  ;;  %v397_v1 = vld [vmem:[#allocation3 + $0x50] sm:$0xff] }
  0x5d   :  { %1179 = vmatprep.mubr.bf16.mxu0 %v1491_v5  ;;  %1096 = vmatpush3.bf16.msra.mxu0 %v1237_v39  ;;  %v401_v39 = vld [vmem:[#allocation3 + $0x70] sm:$0xff] }
  0x5e   :  { %1097 = vmatprep.subr.bf16.mxu0 %v1238_v40 }
  0x61   :  { %1098 = vmatpush3.bf16.msra.mxu0 %v1239_v41 }
  0x62   :  { %1099 = vmatprep.subr.bf16.mxu0 %v1240_v42 }
  0x64   :  { %1180 = vmatmul.mubr.bf16.gmra.mxu0 %v125_v13 }
  0x65   :  { %1183 = vmatprep.mubr.bf16.mxu0 %v127_v20  ;;  %1100 = vmatpush3.bf16.msra.mxu0 %v1241_v43  ;;  %v399_v20 = vld [vmem:[#allocation3 + $0x60] sm:$0xff] }
  0x66   :  { %1101 = vmatprep.subr.bf16.mxu0 %v1242_v44 }
  0x69   :  { %1102 = vmatpush3.bf16.msra.mxu0 %v1243_v45 }
  0x6a   :  { %1103 = vmatprep.subr.bf16.mxu0 %v1244_v33 }
  0x6c   :  { %1184 = vmatmul.mubr.bf16.gmra.mxu0 %v129_v28  ;;  %v389_v28 = vld [vmem:[#allocation3 + $0x10] sm:$0xff] }
  0x6d   :  { %1104 = vmatpush3.bf16.msra.mxu0 %v1245_v34 }
  0xbd   :  { %v432_v48 = vpop.xlane.xlu1 %431  ;;  %v428_v49 = vpop.xlane.xlu0 %427 }
  0xbe   :  { %v457_v50 = vadd.f32 %v432_v48, %v393_v46  ;;  %v455_v51 = vadd.f32 %v428_v49, %v391_v47  ;;  %v1246_v47 = vld [vmem:[#allocation10 + $0x40] sm:$0xff]  }
  0xbf   :  { %v1247_v48 = vld [vmem:[#allocation10] sm:$0xff]   ;;  %1194 = vmatprep.subr.bf16.mxu1 %v1246_v47  ;;  %1105 = vmatprep.subr.bf16.mxu0 %v1246_v47  ;;  %v1248_v47 = vld [vmem:[#allocation9 + $0x10] sm:$0xff]  }
  0xc0   :  { %474 = vst.msk [vmem:[#allocation3 + $0x30] sm:$0xff] %vm97_vm0, %v457_v50  ;;  %472 = vst.msk [vmem:[#allocation3 + $0x20] sm:$0xff] %vm97_vm0, %v455_v51  ;;  %1202 = vmatpush3.bf16.msra.mxu1 %v1247_v48  ;;  %1106 = vmatpush3.bf16.msra.mxu0 %v1247_v48 }
  0xc1   :  { %v434_v54 = vpop.xlane.xlu1 %433  ;;  %v430_v55 = vpop.xlane.xlu0 %429 }
  0xc2   :  { %v458_v56 = vadd.f32 %v434_v54, %v394_v52  ;;  %v456_v57 = vadd.f32 %v430_v55, %v392_v53 }
  0xc4   :  { %475 = vst.msk [vmem:[#allocation3 + $0x38] sm:$0xff] %vm97_vm0, %v458_v56  ;;  %473 = vst.msk [vmem:[#allocation3 + $0x28] sm:$0xff] %vm97_vm0, %v456_v57 }
  0xc5   :  { %v438_v60 = vpop.xlane.xlu1 %437  ;;  %v436_v61 = vpop.xlane.xlu0 %435 }
  0xc6   :  { %v460_v62 = vadd.f32 %v438_v60, %v396_v58  ;;  %v459_v63 = vadd.f32 %v436_v61, %v395_v59 }
  0xc7   :  { %v491_v2 = vld [vmem:[#allocation3 + $0x20] sm:$0xff]  ;;  %v1506_v6 = vld [vmem:[#allocation3 + $0x30] sm:$0xff] }
  0xc8   :  { %477 = vst.msk [vmem:[#allocation3 + $0x48] sm:$0xff] %vm97_vm0, %v460_v62  ;;  %476 = vst.msk [vmem:[#allocation3 + $0x40] sm:$0xff] %vm97_vm0, %v459_v63  ;;  %v523_v3 = vmax.f32 %v491_v2, 1.0  ;;  %v525_v13 = vmax.f32 %v1506_v6, 1.0  ;;  %vm507_vm1 = vcmp.gt.f32.partialorder %v491_v2, 0.0  ;;  %vm509_vm3 = vcmp.gt.f32.partialorder %v1506_v6, 0.0 }
  0xc9   :  { %v442_v4 = vpop.xlane.xlu1 %441  ;;  %v440_v5 = vpop.xlane.xlu0 %439 }
  0xca   :  { %v462_v7 = vadd.f32 %v442_v4, %v398_v0  ;;  %v461_v8 = vadd.f32 %v440_v5, %v397_v1  ;;  %1264 = vrcp.f32 %v523_v3 }
  0xcb   :  { %v1508_v11 = vld [vmem:[#allocation3 + $0x28] sm:$0xff]  ;;  %v1514_v16 = vld [vmem:[#allocation3 + $0x38] sm:$0xff] }
  0xcc   :  { %479 = vst.msk [vmem:[#allocation3 + $0x58] sm:$0xff] %vm97_vm0, %v462_v7  ;;  %478 = vst.msk [vmem:[#allocation3 + $0x50] sm:$0xff] %vm97_vm0, %v461_v8  ;;  %v524_v12 = vmax.f32 %v1508_v11, 1.0  ;;  %v526_v21 = vmax.f32 %v1514_v16, 1.0  ;;  %vm508_vm2 = vcmp.gt.f32.partialorder %v1508_v11, 0.0  ;;  %vm510_vm4 = vcmp.gt.f32.partialorder %v1514_v16, 0.0 }
  0xcd   :  { %v422_v14 = vpop.xlane.xlu1 %421  ;;  %v420_v15 = vpop.xlane.xlu0 %419 }
  0xce   :  { %v452_v17 = vadd.f32 %v422_v14, %v388_v9  ;;  %v451_v18 = vadd.f32 %v420_v15, %v387_v10  ;;  %1266 = vrcp.f32 %v524_v12 }
  0xcf   :  { %1268 = vrcp.f32 %v525_v13  ;;  %v1519_v24 = vld [vmem:[#allocation3 + $0x40] sm:$0xff]  ;;  %v1524_v32 = vld [vmem:[#allocation3 + $0x48] sm:$0xff] }
  0xd0   :  { %469 = vst.msk [vmem:[#allocation3 + $0x8] sm:$0xff] %vm97_vm0, %v452_v17  ;;  %468 = vst.msk [vmem:[#allocation3] sm:$0xff] %vm97_vm0, %v451_v18  ;;  %1270 = vrcp.f32 %v526_v21  ;;  %v527_v29 = vmax.f32 %v1519_v24, 1.0  ;;  %v528_v43 = vmax.f32 %v1524_v32, 1.0  ;;  %vm511_vm6 = vcmp.gt.f32.partialorder %v1519_v24, 0.0 }
  0xd1   :  { %v446_v22 = vpop.xlane.xlu1 %445  ;;  %v444_v23 = vpop.xlane.xlu0 %443  ;;  %vm512_vm8 = vcmp.gt.f32.partialorder %v1524_v32, 0.0 }
  0xd2   :  { %v464_v25 = vadd.f32 %v446_v22, %v400_v19  ;;  %v463_v26 = vadd.f32 %v444_v23, %v399_v20  ;;  %1272 = vrcp.f32 %v527_v29 }
  0xd3   :  { %v1529_v46 = vld [vmem:[#allocation3 + $0x50] sm:$0xff]  ;;  %v498_v57 = vld [vmem:[#allocation3 + $0x58] sm:$0xff] }
  0xd4   :  { %481 = vst.msk [vmem:[#allocation3 + $0x68] sm:$0xff] %vm97_vm0, %v464_v25  ;;  %480 = vst.msk [vmem:[#allocation3 + $0x60] sm:$0xff] %vm97_vm0, %v463_v26  ;;  %v529_v55 = vmax.f32 %v1529_v46, 1.0  ;;  %v530_v61 = vmax.f32 %v498_v57, 1.0  ;;  %vm513_vm10 = vcmp.gt.f32.partialorder %v1529_v46, 0.0  ;;  %vm514_vm11 = vcmp.gt.f32.partialorder %v498_v57, 0.0 }
  0xd5   :  { %v426_v30 = vpop.xlane.xlu1 %425  ;;  %v424_v31 = vpop.xlane.xlu0 %423 }
  0xd6   :  { %v454_v35 = vadd.f32 %v426_v30, %v390_v27  ;;  %v453_v36 = vadd.f32 %v424_v31, %v389_v28 }
  0xd7   :  { %v1265_v37 = vpop.eup %1264  ;;  %v488_v40 = vld [vmem:[#allocation3 + $0x8] sm:$0xff]  ;;  %v487_v63 = vld [vmem:[#allocation3] sm:$0xff] }
  0xd8   :  { %471 = vst.msk [vmem:[#allocation3 + $0x18] sm:$0xff] %vm97_vm0, %v454_v35  ;;  %470 = vst.msk [vmem:[#allocation3 + $0x10] sm:$0xff] %vm97_vm0, %v453_v36  ;;  %v555_v41 = vsel %vm507_vm1, %v1265_v37, 0.0  ;;  %v520_v42 = vmax.f32 %v488_v40, 1.0  ;;  %v519_v3 = vmax.f32 %v487_v63, 1.0  ;;  %vm504_vm5 = vcmp.gt.f32.partialorder %v488_v40, 0.0 }
  0xd9   :  { %v450_v44 = vpop.xlane.xlu1 %449  ;;  %605 = vperm.xlu0 %1214, %v555_v41   ;;  %v448_v45 = vpop.xlane.xlu0 %447  ;;  %vm503_vm13 = vcmp.gt.f32.partialorder %v487_v63, 0.0  ;;  %v1250_v63 = vld [vmem:[#allocation9 + $0x20] sm:$0xff]  }
  0xda   :  { %v466_v49 = vadd.f32 %v450_v44, %v402_v38  ;;  %v465_v50 = vadd.f32 %v448_v45, %v401_v39  ;;  %1274 = vrcp.f32 %v520_v42 }
  0xdb   :  { %v1267_v51 = vpop.eup %1266  ;;  %v500_v52 = vld [vmem:[#allocation3 + $0x68] sm:$0xff]  ;;  %1276 = vrcp.f32 %v528_v43  ;;  %v499_v5 = vld [vmem:[#allocation3 + $0x60] sm:$0xff] }
  0xdc   :  { %483 = vst.msk [vmem:[#allocation3 + $0x78] sm:$0xff] %vm97_vm0, %v466_v49  ;;  %482 = vst.msk [vmem:[#allocation3 + $0x70] sm:$0xff] %vm97_vm0, %v465_v50  ;;  %v556_v53 = vsel %vm508_vm2, %v1267_v51, 0.0  ;;  %v532_v54 = vmax.f32 %v500_v52, 1.0  ;;  %v1269_v56 = vpop.eup %1268  ;;  %v531_v9 = vmax.f32 %v499_v5, 1.0  ;;  %vm516_vm7 = vcmp.gt.f32.partialorder %v500_v52, 0.0 }
  0xdd   :  { %610 = vperm.xlu1 %1215, %v556_v53   ;;  %v557_v59 = vsel %vm509_vm3, %v1269_v56, 0.0  ;;  %v1271_v62 = vpop.eup %1270  ;;  %vm515_vm14 = vcmp.gt.f32.partialorder %v499_v5, 0.0 }
  0xde   :  { %1278 = vrcp.f32 %v532_v54  ;;  %v558_v1 = vsel %vm510_vm4, %v1271_v62, 0.0 }
  0xdf   :  { %v490_v58 = vld [vmem:[#allocation3 + $0x18] sm:$0xff]  ;;  %1280 = vrcp.f32 %v529_v55  ;;  %v1273_v4 = vpop.eup %1272  ;;  %v489_v11 = vld [vmem:[#allocation3 + $0x10] sm:$0xff] }
  0xe0   :  { %v522_v60 = vmax.f32 %v490_v58, 1.0  ;;  %v559_v7 = vsel %vm511_vm6, %v1273_v4, 0.0  ;;  %v521_v15 = vmax.f32 %v489_v11, 1.0  ;;  %vm506_vm9 = vcmp.gt.f32.partialorder %v490_v58, 0.0  ;;  %v1249_v55 = vld [vmem:[#allocation9 + $0x18] sm:$0xff]  }
  0xe1   :  { %615 = vperm.xlu1 %1215, %v557_v59   ;;  %vm505_vm15 = vcmp.gt.f32.partialorder %v489_v11, 0.0 }
  0xe2   :  { %1282 = vrcp.f32 %v522_v60 }
  0xe3   :  { %v502_v0 = vld [vmem:[#allocation3 + $0x78] sm:$0xff]  ;;  %1284 = vrcp.f32 %v530_v61  ;;  %v501_v17 = vld [vmem:[#allocation3 + $0x70] sm:$0xff] }
  0xe4   :  { %v534_v2 = vmax.f32 %v502_v0, 1.0  ;;  %v533_v21 = vmax.f32 %v501_v17, 1.0  ;;  %vm518_vm12 = vcmp.gt.f32.partialorder %v502_v0, 0.0  ;;  %vm517_vm0 = vcmp.gt.f32.partialorder %v501_v17, 0.0 }
  0xe5   :  { %620 = vperm.xlu1 %1215, %v558_v1  }
  0xe6   :  { %1286 = vrcp.f32 %v534_v2 }
  0xe7   :  { %v1275_v6 = vpop.eup %1274  ;;  %1288 = vrcp.f32 %v519_v3 }
  0xe8   :  { %v552_v8 = vsel %vm504_vm5, %v1275_v6, 0.0  ;;  %v1277_v10 = vpop.eup %1276  ;;  %1290 = vrcp.f32 %v531_v9  ;;  %v1251_v9 = vld [vmem:[#allocation9 + $0x28] sm:$0xff]  }
  0xe9   :  { %625 = vperm.xlu1 %1215, %v559_v7   ;;  %590 = vperm.xlu0 %1214, %v552_v8   ;;  %v560_v13 = vsel %vm512_vm8, %v1277_v10, 0.0  ;;  %1292 = vrcp.f32 %v521_v15  ;;  %v1252_v15 = vld [vmem:[#allocation9] sm:$0xff]  }
  0xea   :  { %1294 = vrcp.f32 %v533_v21  ;;  %v1253_v21 = vld [vmem:[#allocation9 + $0x30] sm:$0xff]  }
  0xeb   :  { %v1279_v12 = vpop.eup %1278 }
  0xec   :  { %v564_v14 = vsel %vm516_vm7, %v1279_v12, 0.0  ;;  %v1281_v16 = vpop.eup %1280 }
  0xed   :  { %630 = vperm.xlu1 %1215, %v560_v13   ;;  %650 = vperm.xlu0 %1214, %v564_v14   ;;  %v561_v19 = vsel %vm513_vm10, %v1281_v16, 0.0 }
  0xef   :  { %v1283_v18 = vpop.eup %1282 }
  0xf0   :  { %v554_v20 = vsel %vm506_vm9, %v1283_v18, 0.0  ;;  %v1285_v22 = vpop.eup %1284 }
  0xf1   :  { %635 = vperm.xlu1 %1215, %v561_v19   ;;  %600 = vperm.xlu0 %1214, %v554_v20   ;;  %v562_v24 = vsel %vm514_vm11, %v1285_v22, 0.0 }
  0xf3   :  { %v1287_v23 = vpop.eup %1286 }
  0xf4   :  { %v566_v25 = vsel %vm518_vm12, %v1287_v23, 0.0  ;;  %v1289_v26 = vpop.eup %1288 }
  0xf5   :  { %640 = vperm.xlu1 %1215, %v562_v24   ;;  %660 = vperm.xlu0 %1214, %v566_v25   ;;  %v551_v27 = vsel %vm503_vm13, %v1289_v26, 0.0  ;;  %v1291_v28 = vpop.eup %1290 }
  0xf6   :  { %v563_v29 = vsel %vm515_vm14, %v1291_v28, 0.0  ;;  %v1293_v30 = vpop.eup %1292 }
  0xf7   :  { %v553_v31 = vsel %vm505_vm15, %v1293_v30, 0.0  ;;  %v1295_v32 = vpop.eup %1294 }
  0xf8   :  { %v565_v33 = vsel %vm517_vm0, %v1295_v32, 0.0  ;;  %v1255_v32 = vld [vmem:[#allocation9 + $0x38] sm:$0xff]  }
  0xf9   :  { %585 = vperm.xlu1 %1215, %v551_v27   ;;  %v1254_v27 = vld [vmem:[#allocation9 + $0x8] sm:$0xff]  }
  0xfd   :  { %645 = vperm.xlu1 %1215, %v563_v29  }
 0x101   :  { %595 = vperm.xlu1 %1215, %v553_v31  }
 0x105   :  { %655 = vperm.xlu1 %1215, %v565_v33  }
 0x114   :  { %v1540_v34 = vpop.f32.mrf.mxu0 }
 0x116   :  { %v292_v35 = vpop.f32.mrf.mxu0 }
 0x118   :  { %v1174_v36 = vpop.f32.mrf.mxu0 }
 0x11a   :  { %v295_v37 = vpop.f32.mrf.mxu0 }
 0x11c   :  { %v1177_v38 = vpop.f32.mrf.mxu0 }
 0x11e   :  { %v308_v39 = vpop.f32.mrf.mxu0 }
 0x120   :  { %v1178_v40 = vpop.f32.mrf.mxu0 }
 0x122   :  { %v311_v42 = vpop.f32.mrf.mxu0 }
 0x124   :  { %v1181_v46 = vpop.f32.mrf.mxu0 }
 0x126   :  { %v324_v50 = vpop.f32.mrf.mxu0 }
 0x128   :  { %v1182_v54 = vpop.f32.mrf.mxu0 }
 0x12a   :  { %v327_v58 = vpop.f32.mrf.mxu0 }
 0x12c   :  { %v1185_v62 = vpop.f32.mrf.mxu0 }
 0x12e   :  { %v340_v3 = vpop.f32.mrf.mxu0 }
 0x130   :  { %v1186_v7 = vpop.f32.mrf.mxu0 }
 0x132   :  { %v343_v14 = vpop.f32.mrf.mxu0 }
 0x154   :  { %v606_v41 = vpop.permute.xlu0 %605 }
 0x155   :  { %v667_v44 = vmul.f32 %v606_v41, %v308_v39 }
 0x158   :  { %v611_v43 = vpop.permute.xlu1 %610 }
 0x159   :  { %v668_v45 = vmul.f32 %v611_v43, %v311_v42 }
 0x15b   :  { %v681_v48 = vpack.c.bf16 %v668_v45, %v667_v44 }
 0x15c   :  { %v616_v49 = vpop.permute.xlu1 %615 }
 0x15d   :  { %934 = vmatprep.mubr.bf16.mxu1 %v681_v48  ;;  %v669_v52 = vmul.f32 %v1177_v38, %v616_v49 }
 0x15e   :  { %935 = vmatmul.mubr.bf16.vlgmr.msra.gmra.mxu1 %v1248_v47 }
 0x160   :  { %v621_v51 = vpop.permute.xlu1 %620 }
 0x161   :  { %v670_v53 = vmul.f32 %v1178_v40, %v621_v51 }
 0x163   :  { %v682_v56 = vpack.c.bf16 %v670_v53, %v669_v52 }
 0x164   :  { %v626_v57 = vpop.permute.xlu1 %625  ;;  %v591_v1 = vpop.permute.xlu0 %590 }
 0x165   :  { %942 = vmatprep.mubr.bf16.mxu1 %v682_v56  ;;  %v671_v60 = vmul.f32 %v626_v57, %v324_v50  ;;  %v664_v12 = vmul.f32 %v591_v1, %v295_v37 }
 0x166   :  { %943 = vmatmul.mubr.bf16.gmra.mxu1 %v1249_v55 }
 0x168   :  { %v631_v59 = vpop.permute.xlu1 %630  ;;  %v651_v8 = vpop.permute.xlu0 %650 }
 0x169   :  { %v672_v61 = vmul.f32 %v631_v59, %v327_v58  ;;  %v676_v19 = vmul.f32 %v651_v8, %v343_v14 }
 0x16b   :  { %v683_v0 = vpack.c.bf16 %v672_v61, %v671_v60 }
 0x16c   :  { %v636_v2 = vpop.permute.xlu1 %635  ;;  %v601_v17 = vpop.permute.xlu0 %600 }
 0x16d   :  { %950 = vmatprep.mubr.bf16.mxu1 %v683_v0  ;;  %v673_v5 = vmul.f32 %v1181_v46, %v636_v2  ;;  %v666_v24 = vmul.f32 %v1174_v36, %v601_v17  ;;  %v1546_v36 = vld [vmem:[%s1571_s4] ss:$0 sm:$0xff]  ;;  %s1412_s4 = smov [#allocation12]  }
 0x16e   :  { %951 = vmatmul.mubr.bf16.gmra.mxu1 %v1250_v63  ;;  %s1020_s13 = sshll.u32 %s1412_s4, 4  ;;  %s1021_s13 = int_to_ptr.vmem [resolvable:$true] %s1020_s13 }
 0x16f   :  { %s1376_s14 = scalar_lea.vmem %s1021_s13, 2048  ;;  %p1381_p7 = scmp.lt.s32.totalorder %s1021_s13, %s1021_s13 }
 0x170   :  { %v641_v4 = vpop.permute.xlu1 %640  ;;  %v661_v26 = vpop.permute.xlu0 %660  ;;  %p1377_p6 = scmp.ne.s32.totalorder %s1021_s13, %s1376_s14  ;;  %p1382_p8 = scmp.lt.s32.totalorder %s1376_s14, %s1376_s14 }
 0x171   :  { %v674_v6 = vmul.f32 %v1182_v54, %v641_v4  ;;  %v678_v30 = vmul.f32 %v1186_v7, %v661_v26 }
 0x172   :  { %p1383_p9 = por %p1382_p8, %p1381_p7 }
 0x173   :  { %v684_v10 = vpack.c.bf16 %v674_v6, %v673_v5 }
 0x174   :  { %v586_v11 = vpop.permute.xlu1 %585  ;;  %p1384_p10 = pnand %p1383_p9, %p1377_p6 }
 0x175   :  { %v663_v13 = vmul.f32 %v586_v11, %v292_v35  ;;  %958 = vmatprep.mubr.bf16.mxu1 %v684_v10 }
 0x176   :  { %959 = vmatmul.mubr.bf16.gmra.mxu1 %v1251_v9 }
 0x177   :  { %v679_v16 = vpack.c.bf16 %v664_v12, %v663_v13 }
 0x178   :  { %v646_v18 = vpop.permute.xlu1 %645 }
 0x179   :  { %v675_v20 = vmul.f32 %v646_v18, %v340_v3  ;;  %918 = vmatprep.mubr.bf16.mxu0 %v679_v16 }
 0x17a   :  { %919 = vmatmul.mubr.bf16.vlgmr.msra.gmra.mxu0 %v1252_v15 }
 0x17b   :  { %v685_v22 = vpack.c.bf16 %v676_v19, %v675_v20 }
 0x17c   :  { %v596_v23 = vpop.permute.xlu1 %595 }
 0x17d   :  { %v665_v25 = vmul.f32 %v1540_v34, %v596_v23  ;;  %966 = vmatprep.mubr.bf16.mxu1 %v685_v22 }
 0x17e   :  { %967 = vmatmul.mubr.bf16.gmra.mxu1 %v1253_v21 }
 0x17f   :  { %v680_v28 = vpack.c.bf16 %v666_v24, %v665_v25 }
 0x180   :  { %v656_v29 = vpop.permute.xlu1 %655 }
 0x181   :  { %v677_v31 = vmul.f32 %v1185_v62, %v656_v29  ;;  %926 = vmatprep.mubr.bf16.mxu0 %v680_v28 }
 0x182   :  { %927 = vmatmul.mubr.bf16.gmra.mxu0 %v1254_v27 }
 0x183   :  { %v686_v33 = vpack.c.bf16 %v678_v30, %v677_v31 }
 0x185   :  { %974 = vmatprep.mubr.bf16.mxu1 %v686_v33 }
 0x186   :  { %975 = vmatmul.mubr.bf16.gmra.mxu1 %v1255_v32 }
 0x21e   :  { %v1119_v35 = vpop.f32.mrf.mxu1 }
 0x220   :  { %v1120_v34 = vpop.f32.mrf.mxu1 }
 0x221   :  { %v1121_v37 = vadd.f32 %v1120_v34, %v1119_v35 }
 0x222   :  { %v1122_v38 = vpop.f32.mrf.mxu1 }
 0x223   :  { %v937_v39 = vadd.f32 %v1121_v37, %v1546_v36 }
 0x224   :  { %v1123_v40 = vpop.f32.mrf.mxu1 }
 0x225   :  { %v987_v41 = vmax.f32 %v937_v39, 0.0  ;;  %v1124_v42 = vadd.f32 %v1123_v40, %v1122_v38 }
 0x226   :  { %v1125_v43 = vpop.f32.mrf.mxu1 }
 0x227   :  { %1003 = vst [vmem:[#allocation12 + $0x20] sm:$0xff] %v987_v41  ;;  %v940_v44 = vadd.f32 %v1124_v42, %v1546_v36 }
 0x228   :  { %v1126_v45 = vpop.f32.mrf.mxu1 }
 0x229   :  { %v988_v46 = vmax.f32 %v940_v44, 0.0  ;;  %v1127_v47 = vadd.f32 %v1126_v45, %v1125_v43 }
 0x22a   :  { %v1128_v48 = vpop.f32.mrf.mxu1 }
 0x22b   :  { %1004 = vst [vmem:[#allocation12 + $0x28] sm:$0xff] %v988_v46  ;;  %v945_v49 = vadd.f32 %v1127_v47, %v1546_v36 }
 0x22c   :  { %v1129_v50 = vpop.f32.mrf.mxu1 }
 0x22d   :  { %v989_v51 = vmax.f32 %v945_v49, 0.0  ;;  %v1130_v52 = vadd.f32 %v1129_v50, %v1128_v48 }
 0x22e   :  { %v1131_v53 = vpop.f32.mrf.mxu1 }
 0x22f   :  { %1005 = vst [vmem:[#allocation12 + $0x30] sm:$0xff] %v989_v51  ;;  %v948_v54 = vadd.f32 %v1130_v52, %v1546_v36 }
 0x230   :  { %v1132_v55 = vpop.f32.mrf.mxu1 }
 0x231   :  { %v990_v56 = vmax.f32 %v948_v54, 0.0  ;;  %v1133_v57 = vadd.f32 %v1132_v55, %v1131_v53 }
 0x232   :  { %v1134_v58 = vpop.f32.mrf.mxu1 }
 0x233   :  { %1006 = vst [vmem:[#allocation12 + $0x38] sm:$0xff] %v990_v56  ;;  %v953_v59 = vadd.f32 %v1133_v57, %v1546_v36 }
 0x234   :  { %v1135_v60 = vpop.f32.mrf.mxu1 }
 0x235   :  { %v991_v61 = vmax.f32 %v953_v59, 0.0  ;;  %v1136_v62 = vadd.f32 %v1135_v60, %v1134_v58 }
 0x236   :  { %v1137_v63 = vpop.f32.mrf.mxu1 }
 0x237   :  { %1007 = vst [vmem:[#allocation12 + $0x40] sm:$0xff] %v991_v61  ;;  %v956_v0 = vadd.f32 %v1136_v62, %v1546_v36 }
 0x238   :  { %v1138_v1 = vpop.f32.mrf.mxu1 }
 0x239   :  { %v992_v2 = vmax.f32 %v956_v0, 0.0  ;;  %v1139_v3 = vadd.f32 %v1138_v1, %v1137_v63 }
 0x23a   :  { %v1107_v4 = vpop.f32.mrf.mxu0  ;;  %v1140_v5 = vpop.f32.mrf.mxu1 }
 0x23b   :  { %1008 = vst [vmem:[#allocation12 + $0x48] sm:$0xff] %v992_v2  ;;  %v961_v6 = vadd.f32 %v1139_v3, %v1546_v36 }
 0x23c   :  { %v1108_v7 = vpop.f32.mrf.mxu0  ;;  %v1141_v8 = vpop.f32.mrf.mxu1 }
 0x23d   :  { %v993_v9 = vmax.f32 %v961_v6, 0.0  ;;  %v1109_v10 = vadd.f32 %v1108_v7, %v1107_v4  ;;  %v1142_v11 = vadd.f32 %v1141_v8, %v1140_v5 }
 0x23e   :  { %v1110_v12 = vpop.f32.mrf.mxu0  ;;  %v1143_v13 = vpop.f32.mrf.mxu1 }
 0x23f   :  { %1009 = vst [vmem:[#allocation12 + $0x50] sm:$0xff] %v993_v9  ;;  %v921_v14 = vadd.f32 %v1109_v10, %v1546_v36  ;;  %v964_v15 = vadd.f32 %v1142_v11, %v1546_v36 }
 0x240   :  { %v1111_v16 = vpop.f32.mrf.mxu0  ;;  %v1144_v17 = vpop.f32.mrf.mxu1 }
 0x241   :  { %v983_v18 = vmax.f32 %v921_v14, 0.0  ;;  %v994_v19 = vmax.f32 %v964_v15, 0.0  ;;  %v1112_v20 = vadd.f32 %v1111_v16, %v1110_v12  ;;  %v1145_v21 = vadd.f32 %v1144_v17, %v1143_v13 }
 0x242   :  { %v1113_v22 = vpop.f32.mrf.mxu0  ;;  %v1146_v23 = vpop.f32.mrf.mxu1 }
 0x243   :  { %999 = vst [vmem:[#allocation12] sm:$0xff] %v983_v18  ;;  %1010 = vst [vmem:[#allocation12 + $0x58] sm:$0xff] %v994_v19  ;;  %v924_v24 = vadd.f32 %v1112_v20, %v1546_v36  ;;  %v969_v25 = vadd.f32 %v1145_v21, %v1546_v36 }
 0x244   :  { %v1114_v26 = vpop.f32.mrf.mxu0  ;;  %v1147_v27 = vpop.f32.mrf.mxu1 }
 0x245   :  { %v984_v28 = vmax.f32 %v924_v24, 0.0  ;;  %v995_v29 = vmax.f32 %v969_v25, 0.0  ;;  %v1115_v30 = vadd.f32 %v1114_v26, %v1113_v22  ;;  %v1148_v31 = vadd.f32 %v1147_v27, %v1146_v23 }
 0x246   :  { %v1116_v32 = vpop.f32.mrf.mxu0  ;;  %v1149_v33 = vpop.f32.mrf.mxu1 }
 0x247   :  { %1000 = vst [vmem:[#allocation12 + $0x8] sm:$0xff] %v984_v28  ;;  %1011 = vst [vmem:[#allocation12 + $0x60] sm:$0xff] %v995_v29  ;;  %v929_v35 = vadd.f32 %v1115_v30, %v1546_v36  ;;  %v972_v34 = vadd.f32 %v1148_v31, %v1546_v36 }
 0x248   :  { %v1117_v37 = vpop.f32.mrf.mxu0  ;;  %v1150_v38 = vpop.f32.mrf.mxu1 }
 0x249   :  { %v985_v39 = vmax.f32 %v929_v35, 0.0  ;;  %v996_v40 = vmax.f32 %v972_v34, 0.0  ;;  %v1118_v41 = vadd.f32 %v1117_v37, %v1116_v32  ;;  %v1151_v42 = vadd.f32 %v1150_v38, %v1149_v33 }
 0x24a   :  { %v1152_v43 = vpop.f32.mrf.mxu1 }
 0x24b   :  { %1001 = vst [vmem:[#allocation12 + $0x10] sm:$0xff] %v985_v39  ;;  %1012 = vst [vmem:[#allocation12 + $0x68] sm:$0xff] %v996_v40  ;;  %v932_v44 = vadd.f32 %v1118_v41, %v1546_v36  ;;  %v977_v45 = vadd.f32 %v1151_v42, %v1546_v36 }
 0x24c   :  { %v1153_v46 = vpop.f32.mrf.mxu1 }
 0x24d   :  { %v986_v47 = vmax.f32 %v932_v44, 0.0  ;;  %v997_v48 = vmax.f32 %v977_v45, 0.0  ;;  %v1154_v49 = vadd.f32 %v1153_v46, %v1152_v43 }
 0x24f   :  { %1002 = vst [vmem:[#allocation12 + $0x18] sm:$0xff] %v986_v47  ;;  %1013 = vst [vmem:[#allocation12 + $0x70] sm:$0xff] %v997_v48  ;;  %v980_v50 = vadd.f32 %v1154_v49, %v1546_v36 }
 0x251   :  { %v998_v51 = vmax.f32 %v980_v50, 0.0 }
 0x253   :  { %1014 = vst [vmem:[#allocation12 + $0x78] sm:$0xff] %v998_v51 }
 0x254   :  { %1387 = shalt.err (!%p1384_p10)
}
 0x255   :  { %s1413_s15 = smov 128   ;;  %s1414_s16 = smov 8  }
 0x256   :  { %1026 = dma.vmem_to_hbm [thread:$0]  %s1021_s13, 2048, %s1572_s5, [#allocation6], %s1413_s15, %s1413_s15, %s1414_s16  }
 0x257   :  { %1402 = dma.done.wait [#allocation6], 2048  }
 0x258   :  { %1403 = vsyncadd [#allocation6], 4294965248 }
 0x259   :  { %1030 = vsyncpa [#allocation5], 1 }
 0x25a   :  { %1031 = vsyncpa [#allocation8], 1 }
 0x25b   :  { %1032 = vsyncpa [#allocation11], 1 }
 0x25c   :  { %1033 = vsyncpa [#allocation6], 1 }

</bundles_post_ra>
